<compile_context>
chip_gen: v6e
topology: v6e:2x2x1
jax: 0.10.0
libtpu: 0.0.40
codegen_flags: <defaults>
</compile_context>

<pallas_src>
import functools

import jax
import jax.numpy as jnp
from jax import lax
from jax.experimental import pallas as pl
from jax.experimental.pallas import tpu as pltpu


def _round_up(x: int, m: int) -> int:
    return (x + m - 1) // m * m


def _dueling_kernel(x_ref, w1_ref, w2_ref, w3_ref, w4_ref, bias_ref,
                    out_ref, psum_ref, *, b_real, fc1, fc2, fc3):
    """One batch tile: 3 fused ReLU layers per stream + combined dueling head."""
    f32 = jnp.float32
    bf16 = jnp.bfloat16

    bp = bias_ref[...]                        # [8, slab_w] f32 bias/param slab
    x = x_ref[...].astype(bf16)               # [tb, S]
    tb = x_ref.shape[0]
    out_pad = w4_ref.shape[1]

    # ---- layer 1: both streams share x -> one fused matmul [tb, 2*fc1] ----
    h1 = jnp.maximum(
        jnp.dot(x, w1_ref[...], preferred_element_type=f32) + bp[0:1, :2 * fc1],
        0.0).astype(bf16)
    h1v, h1a = h1[:, :fc1], h1[:, fc1:2 * fc1]

    # ---- layer 2 (two dots from one packed, VMEM-resident operand) ----
    w2 = w2_ref[...]
    h2v = jnp.maximum(
        jnp.dot(h1v, w2[:, :fc2], preferred_element_type=f32)
        + bp[1:2, :fc2], 0.0).astype(bf16)
    h2a = jnp.maximum(
        jnp.dot(h1a, w2[:, fc2:2 * fc2], preferred_element_type=f32)
        + bp[1:2, fc2:2 * fc2], 0.0).astype(bf16)

    # ---- layer 3 ----
    w3 = w3_ref[...]
    h3v = jnp.maximum(
        jnp.dot(h2v, w3[:, :fc3], preferred_element_type=f32)
        + bp[2:3, :fc3], 0.0).astype(bf16)
    h3a = jnp.maximum(
        jnp.dot(h2a, w3[:, fc3:2 * fc3], preferred_element_type=f32)
        + bp[2:3, fc3:2 * fc3], 0.0).astype(bf16)

    # ---- combined dueling head: one MXU matmul emits V+ADV_j per action
    #      column and pure V in the spare padded column (index action_size). ----
    h3 = jnp.concatenate([h3v, h3a], axis=-1)            # [tb, 2*fc3] bf16
    res = (jnp.dot(h3, w4_ref[...], preferred_element_type=f32)
           + bp[3:4, :out_pad])                          # [tb, out_pad] f32
    out_ref[...] = res                                   # lane-dense, unmasked vst

    # ---- masked per-tile advantage sum (sum pass of the global mean) ----
    # Column weights (slab row 4): +1 for real action cols, -A for the V col,
    # 0 for padded cols  =>  sum(res * colw) == sum over actions of ADV.
    contrib = res * bp[4:5, :out_pad]
    if b_real is not None:                               # mask padded batch rows
        rows = pl.program_id(0) * tb + lax.broadcasted_iota(jnp.int32, res.shape, 0)
        contrib = jnp.where(rows < b_real, contrib, 0.0)
    psum_ref[...] = jnp.full(psum_ref.shape, jnp.sum(contrib), f32)


def dueling_dqn_forward(x, packed, *, action_size, fc1=256, fc2=256, fc3=128,
                        batch_tile=256):
    """x: [B, state_size] f32; packed = (w1, w2, w3, w4_combined, bias_slab)."""
    w1, w2, w3, w4, slab = packed
    b = x.shape[0]
    s_in = x.shape[1]
    out_pad = w4.shape[1]

    tb = _round_up(min(batch_tile, _round_up(max(b, 1), 8)), 8)
    b_pad = _round_up(max(b, 1), tb)
    if b_pad != b:
        x = jnp.pad(x, ((0, b_pad - b), (0, 0)))
    num_tiles = b_pad // tb

    kernel = functools.partial(
        _dueling_kernel,
        b_real=(b if b_pad != b else None),   # skip the row mask when exact
        fc1=fc1, fc2=fc2, fc3=fc3)

    const = lambda i: (0, 0)                  # weights: same block every step => VMEM-resident
    grid_spec = pltpu.PrefetchScalarGridSpec(
        num_scalar_prefetch=0,
        grid=(num_tiles,),
        in_specs=[
            pl.BlockSpec((tb, s_in), lambda i: (i, 0)),   # batch-tiled input
            pl.BlockSpec(w1.shape, const),
            pl.BlockSpec(w2.shape, const),
            pl.BlockSpec(w3.shape, const),
            pl.BlockSpec(w4.shape, const),
            pl.BlockSpec(slab.shape, const),
        ],
        out_specs=[
            pl.BlockSpec((tb, out_pad), lambda i: (i, 0)),  # q_pre tile (lane-dense)
            pl.BlockSpec((8, 128), lambda i: (0, i)),       # per-tile adv partial sum
        ],
    )

    flops = 2 * b_pad * (s_in * 2 * fc1 + 2 * fc1 * fc2 + 2 * fc2 * fc3
                         + 2 * fc3 * out_pad)
    bytes_accessed = int(
        b_pad * s_in * 4
        + sum(int(a.size) * a.dtype.itemsize for a in packed)
        + b_pad * out_pad * 4 + 8 * 128 * num_tiles * 4)

    q_pre, psums = pl.pallas_call(
        kernel,
        grid_spec=grid_spec,
        out_shape=(
            jax.ShapeDtypeStruct((b_pad, out_pad), jnp.float32),
            jax.ShapeDtypeStruct((8, 128 * num_tiles), jnp.float32),
        ),
        compiler_params=pltpu.CompilerParams(
            dimension_semantics=("parallel",),        # v7x: shard batch over 2 TCs
            vmem_limit_bytes=32 * 1024 * 1024),       # v7x-safe scoped budget
        cost_estimate=pl.CostEstimate(flops=flops, transcendentals=0,
                                      bytes_accessed=bytes_accessed),
    )(x, w1, w2, w3, w4, slab)

    # Combine pass (tiny XLA epilogue): global mean over real batch x actions,
    # then the broadcast subtraction.  q_pre cols < A already hold V + ADV.
    adv_total = jnp.sum(psums.reshape(8, num_tiles, 128)[0, :, 0])
    adv_mean = adv_total / float(b * action_size)
    return q_pre[:b, :action_size] - adv_mean


def init_params(key, state_size, action_size,
                fc1_units=256, fc2_units=256, fc3_units=128):
    """PyTorch-style uniform(-1/sqrt(fan_in), 1/sqrt(fan_in)) init.

    Returns 16 f32 arrays: weights stored [in, out], biases [1, out]."""
    dims_v = [(state_size, fc1_units), (fc1_units, fc2_units),
              (fc2_units, fc3_units), (fc3_units, 1)]
    dims_a = [(state_size, fc1_units), (fc1_units, fc2_units),
              (fc2_units, fc3_units), (fc3_units, action_size)]
    params = []
    for fan_in, fan_out in dims_v + dims_a:
        key, kw, kb = jax.random.split(key, 3)
        bound = 1.0 / (fan_in ** 0.5)
        w = jax.random.uniform(kw, (fan_in, fan_out), jnp.float32, -bound, bound)
        bias = jax.random.uniform(kb, (1, fan_out), jnp.float32, -bound, bound)
        params.extend([w, bias])
    return tuple(params)


def pack_params(raw, action_size, fc1=256, fc2=256, fc3=128):
    """Pack the 16 raw f32 params into 5 kernel operands (bf16 weights + one
    f32 bias/colweight slab).  Value head is folded into the head weight."""
    (w1v, b1v, w2v, b2v, w3v, b3v, w4v, b4v,
     w1a, b1a, w2a, b2a, w3a, b3a, w4a, b4a) = raw
    bf16 = jnp.bfloat16
    out_pad = _round_up(action_size + 1, 128)   # spare lane-dense column for V
    slab_w = max(2 * fc1, 2 * fc2, 2 * fc3, out_pad)

    w1 = jnp.concatenate([w1v, w1a], axis=1).astype(bf16)    # [S,   2*fc1]
    w2 = jnp.concatenate([w2v, w2a], axis=1).astype(bf16)    # [fc1, 2*fc2]
    w3 = jnp.concatenate([w3v, w3a], axis=1).astype(bf16)    # [fc2, 2*fc3]

    # Combined head: rows 0..fc3-1 carry w4v replicated into cols 0..A
    # (every action column accumulates V; col A accumulates pure V),
    # rows fc3..2*fc3-1 carry w4a in cols 0..A-1.  Padded cols stay 0.
    w4 = jnp.zeros((2 * fc3, out_pad), jnp.float32)
    w4 = w4.at[:fc3, :action_size + 1].set(
        jnp.broadcast_to(w4v, (fc3, action_size + 1)))
    w4 = w4.at[fc3:, :action_size].set(w4a)
    w4 = w4.astype(bf16)

    slab = jnp.zeros((8, slab_w), jnp.float32)
    slab = slab.at[0, :2 * fc1].set(jnp.concatenate([b1v[0], b1a[0]]))
    slab = slab.at[1, :2 * fc2].set(jnp.concatenate([b2v[0], b2a[0]]))
    slab = slab.at[2, :2 * fc3].set(jnp.concatenate([b3v[0], b3a[0]]))
    head_bias = jnp.zeros((out_pad,), jnp.float32)
    head_bias = head_bias.at[:action_size].set(b4a[0] + b4v[0, 0])
    head_bias = head_bias.at[action_size].set(b4v[0, 0])
    slab = slab.at[3, :out_pad].set(head_bias)
    colw = jnp.zeros((out_pad,), jnp.float32)        # +1 adv cols, -A value col, 0 pad
    colw = colw.at[:action_size].set(1.0)
    colw = colw.at[action_size].set(-float(action_size))
    slab = slab.at[4, :out_pad].set(colw)
    return (w1, w2, w3, w4, slab)


def reference_forward(x, raw):
    """Pure-JAX reference mirroring the PyTorch module structure with the same
    numeric path as the kernel (bf16 weights into the MXU, f32 accumulation)."""
    (w1v, b1v, w2v, b2v, w3v, b3v, w4v, b4v,
     w1a, b1a, w2a, b2a, w3a, b3a, w4a, b4a) = raw
    bf16 = jnp.bfloat16

    def lin(h, w, b):
        return jnp.dot(h.astype(bf16), w.astype(bf16),
                       preferred_element_type=jnp.float32) + b

    def stream3(h, w1, b1, w2, b2, w3, b3):
        h = jnp.maximum(lin(h, w1, b1), 0.0)
        h = jnp.maximum(lin(h, w2, b2), 0.0)
        return jnp.maximum(lin(h, w3, b3), 0.0)

    h3v = stream3(x, w1v, b1v, w2v, b2v, w3v, b3v)
    h3a = stream3(x, w1a, b1a, w2a, b2a, w3a, b3a)
    v = lin(h3v, w4v, b4v)           # [B, 1]
    a = lin(h3a, w4a, b4a)           # [B, A]
    return v + (a - a.mean())        # PyTorch `.mean()` with no dim: global mean


if __name__ == "__main__":
    state_size, action_size = 16, 4
    fc1 = fc2 = 256
    fc3 = 128

    key = jax.random.PRNGKey(0)
    key, k_small, k_big = jax.random.split(key, 3)
    raw = init_params(key, state_size, action_size, fc1, fc2, fc3)
    packed = pack_params(raw, action_size, fc1, fc2, fc3)

    # Small batch: single grid step.
    x8 = jax.random.normal(k_small, (8, state_size), jnp.float32)
    out8 = jax.block_until_ready(dueling_dqn_forward(
        x8, packed, action_size=action_size, fc1=fc1, fc2=fc2, fc3=fc3))
    ref8 = reference_forward(x8, raw)
    assert out8.shape == (8, action_size)
    err8 = float(jnp.max(jnp.abs(out8 - ref8)))
    assert jnp.allclose(out8, ref8, atol=2e-3, rtol=2e-3), f"small max err={err8}"

    # Ragged larger batch: 3 grid steps, padded last tile, VMEM-resident weights.
    x300 = jax.random.normal(k_big, (300, state_size), jnp.float32)
    out300 = jax.block_until_ready(dueling_dqn_forward(
        x300, packed, action_size=action_size, fc1=fc1, fc2=fc2, fc3=fc3,
        batch_tile=128))
    ref300 = reference_forward(x300, raw)
    assert out300.shape == (300, action_size)
    err300 = float(jnp.max(jnp.abs(out300 - ref300)))
    assert jnp.allclose(out300, ref300, atol=2e-3, rtol=2e-3), f"big max err={err300}"

    print("KERNEL_OK")
</pallas_src>

<mosaic_0001>
module attributes {stable_mosaic.version = 11 : i64} {
  func.func @_dueling_kernel(%arg0: i32, %arg1: memref<8x16xf32, #tpu.memory_space<vmem>>, %arg2: memref<16x512xbf16, #tpu.memory_space<vmem>>, %arg3: memref<256x512xbf16, #tpu.memory_space<vmem>>, %arg4: memref<256x256xbf16, #tpu.memory_space<vmem>>, %arg5: memref<256x128xbf16, #tpu.memory_space<vmem>>, %arg6: memref<8x512xf32, #tpu.memory_space<vmem>>, %arg7: memref<8x128xf32, #tpu.memory_space<vmem>>, %arg8: memref<8x128xf32, #tpu.memory_space<vmem>>) attributes {dimension_semantics = [#tpu.dimension_semantics<parallel>], iteration_bounds = array<i64: 1>, scalar_prefetch = 0 : i64, scratch_operands = 0 : i64, tpu.core_type = #tpu.core_type<tc>, window_params = [{transform_indices = @transform_0, window_bounds = array<i64: 8, 16>}, {pipeline_mode = #tpu.pipeline_mode<synchronous>, transform_indices = @transform_1, window_bounds = array<i64: 16, 512>}, {pipeline_mode = #tpu.pipeline_mode<synchronous>, transform_indices = @transform_2, window_bounds = array<i64: 256, 512>}, {pipeline_mode = #tpu.pipeline_mode<synchronous>, transform_indices = @transform_3, window_bounds = array<i64: 256, 256>}, {pipeline_mode = #tpu.pipeline_mode<synchronous>, transform_indices = @transform_4, window_bounds = array<i64: 256, 128>}, {pipeline_mode = #tpu.pipeline_mode<synchronous>, transform_indices = @transform_5, window_bounds = array<i64: 8, 512>}, {transform_indices = @transform_6, window_bounds = array<i64: 8, 128>}, {transform_indices = @transform_7, window_bounds = array<i64: 8, 128>}]} {
    %c0 = arith.constant 0 : index
    %c0_0 = arith.constant 0 : index
    %0 = vector.load %arg6[%c0, %c0_0] : memref<8x512xf32, #tpu.memory_space<vmem>>, vector<8x512xf32>
    %c0_1 = arith.constant 0 : index
    %c0_2 = arith.constant 0 : index
    %1 = vector.load %arg1[%c0_1, %c0_2] : memref<8x16xf32, #tpu.memory_space<vmem>>, vector<8x16xf32>
    %2 = arith.truncf %1 : vector<8x16xf32> to vector<8x16xbf16>
    %c0_3 = arith.constant 0 : index
    %c0_4 = arith.constant 0 : index
    %3 = vector.load %arg2[%c0_3, %c0_4] : memref<16x512xbf16, #tpu.memory_space<vmem>>, vector<16x512xbf16>
    %cst = arith.constant dense<0.000000e+00> : vector<8x512xf32>
    %4 = tpu.matmul %2, %3, %cst {dimension_numbers = #tpu.dot_dimension_numbers<[1], [0], [0], [1], [0, 0, 1, 1], [], []>} : vector<8x16xbf16>, vector<16x512xbf16>, vector<8x512xf32> -> vector<8x512xf32>
    %5 = vector.extract_strided_slice %0 {offsets = [0, 0], sizes = [1, 512], strides = [1, 1]} : vector<8x512xf32> to vector<1x512xf32>
    %6 = vector.broadcast %5 : vector<1x512xf32> to vector<8x512xf32>
    %7 = arith.addf %4, %6 : vector<8x512xf32>
    %cst_5 = arith.constant 0.000000e+00 : f32
    %8 = vector.broadcast %cst_5 : f32 to vector<8x512xf32>
    %9 = arith.maximumf %7, %8 : vector<8x512xf32>
    %10 = arith.truncf %9 : vector<8x512xf32> to vector<8x512xbf16>
    %11 = vector.extract_strided_slice %10 {offsets = [0, 0], sizes = [8, 256], strides = [1, 1]} : vector<8x512xbf16> to vector<8x256xbf16>
    %12 = vector.extract_strided_slice %10 {offsets = [0, 256], sizes = [8, 256], strides = [1, 1]} : vector<8x512xbf16> to vector<8x256xbf16>
    %c0_6 = arith.constant 0 : index
    %c0_7 = arith.constant 0 : index
    %13 = vector.load %arg3[%c0_6, %c0_7] : memref<256x512xbf16, #tpu.memory_space<vmem>>, vector<256x512xbf16>
    %14 = vector.extract_strided_slice %13 {offsets = [0, 0], sizes = [256, 256], strides = [1, 1]} : vector<256x512xbf16> to vector<256x256xbf16>
    %cst_8 = arith.constant dense<0.000000e+00> : vector<8x256xf32>
    %15 = tpu.matmul %11, %14, %cst_8 {dimension_numbers = #tpu.dot_dimension_numbers<[1], [0], [0], [1], [0, 0, 1, 1], [], []>} : vector<8x256xbf16>, vector<256x256xbf16>, vector<8x256xf32> -> vector<8x256xf32>
    %16 = vector.extract_strided_slice %0 {offsets = [1, 0], sizes = [1, 256], strides = [1, 1]} : vector<8x512xf32> to vector<1x256xf32>
    %17 = vector.broadcast %16 : vector<1x256xf32> to vector<8x256xf32>
    %18 = arith.addf %15, %17 : vector<8x256xf32>
    %cst_9 = arith.constant 0.000000e+00 : f32
    %19 = vector.broadcast %cst_9 : f32 to vector<8x256xf32>
    %20 = arith.maximumf %18, %19 : vector<8x256xf32>
    %21 = arith.truncf %20 : vector<8x256xf32> to vector<8x256xbf16>
    %22 = vector.extract_strided_slice %13 {offsets = [0, 256], sizes = [256, 256], strides = [1, 1]} : vector<256x512xbf16> to vector<256x256xbf16>
    %cst_10 = arith.constant dense<0.000000e+00> : vector<8x256xf32>
    %23 = tpu.matmul %12, %22, %cst_10 {dimension_numbers = #tpu.dot_dimension_numbers<[1], [0], [0], [1], [0, 0, 1, 1], [], []>} : vector<8x256xbf16>, vector<256x256xbf16>, vector<8x256xf32> -> vector<8x256xf32>
    %24 = vector.extract_strided_slice %0 {offsets = [1, 256], sizes = [1, 256], strides = [1, 1]} : vector<8x512xf32> to vector<1x256xf32>
    %25 = vector.broadcast %24 : vector<1x256xf32> to vector<8x256xf32>
    %26 = arith.addf %23, %25 : vector<8x256xf32>
    %cst_11 = arith.constant 0.000000e+00 : f32
    %27 = vector.broadcast %cst_11 : f32 to vector<8x256xf32>
    %28 = arith.maximumf %26, %27 : vector<8x256xf32>
    %29 = arith.truncf %28 : vector<8x256xf32> to vector<8x256xbf16>
    %c0_12 = arith.constant 0 : index
    %c0_13 = arith.constant 0 : index
    %30 = vector.load %arg4[%c0_12, %c0_13] : memref<256x256xbf16, #tpu.memory_space<vmem>>, vector<256x256xbf16>
    %31 = vector.extract_strided_slice %30 {offsets = [0, 0], sizes = [256, 128], strides = [1, 1]} : vector<256x256xbf16> to vector<256x128xbf16>
    %cst_14 = arith.constant dense<0.000000e+00> : vector<8x128xf32>
    %32 = tpu.matmul %21, %31, %cst_14 {dimension_numbers = #tpu.dot_dimension_numbers<[1], [0], [0], [1], [0, 0, 1, 1], [], []>} : vector<8x256xbf16>, vector<256x128xbf16>, vector<8x128xf32> -> vector<8x128xf32>
    %33 = vector.extract_strided_slice %0 {offsets = [2, 0], sizes = [1, 128], strides = [1, 1]} : vector<8x512xf32> to vector<1x128xf32>
    %34 = vector.broadcast %33 : vector<1x128xf32> to vector<8x128xf32>
    %35 = arith.addf %32, %34 : vector<8x128xf32>
    %cst_15 = arith.constant 0.000000e+00 : f32
    %36 = vector.broadcast %cst_15 : f32 to vector<8x128xf32>
    %37 = arith.maximumf %35, %36 : vector<8x128xf32>
    %38 = arith.truncf %37 : vector<8x128xf32> to vector<8x128xbf16>
    %39 = vector.extract_strided_slice %30 {offsets = [0, 128], sizes = [256, 128], strides = [1, 1]} : vector<256x256xbf16> to vector<256x128xbf16>
    %cst_16 = arith.constant dense<0.000000e+00> : vector<8x128xf32>
    %40 = tpu.matmul %29, %39, %cst_16 {dimension_numbers = #tpu.dot_dimension_numbers<[1], [0], [0], [1], [0, 0, 1, 1], [], []>} : vector<8x256xbf16>, vector<256x128xbf16>, vector<8x128xf32> -> vector<8x128xf32>
    %41 = vector.extract_strided_slice %0 {offsets = [2, 128], sizes = [1, 128], strides = [1, 1]} : vector<8x512xf32> to vector<1x128xf32>
    %42 = vector.broadcast %41 : vector<1x128xf32> to vector<8x128xf32>
    %43 = arith.addf %40, %42 : vector<8x128xf32>
    %cst_17 = arith.constant 0.000000e+00 : f32
    %44 = vector.broadcast %cst_17 : f32 to vector<8x128xf32>
    %45 = arith.maximumf %43, %44 : vector<8x128xf32>
    %46 = arith.truncf %45 : vector<8x128xf32> to vector<8x128xbf16>
    %47 = tpu.concatenate %38, %46 in 1 : vector<8x128xbf16>, vector<8x128xbf16> -> vector<8x256xbf16>
    %c0_18 = arith.constant 0 : index
    %c0_19 = arith.constant 0 : index
    %48 = vector.load %arg5[%c0_18, %c0_19] : memref<256x128xbf16, #tpu.memory_space<vmem>>, vector<256x128xbf16>
    %cst_20 = arith.constant dense<0.000000e+00> : vector<8x128xf32>
    %49 = tpu.matmul %47, %48, %cst_20 {dimension_numbers = #tpu.dot_dimension_numbers<[1], [0], [0], [1], [0, 0, 1, 1], [], []>} : vector<8x256xbf16>, vector<256x128xbf16>, vector<8x128xf32> -> vector<8x128xf32>
    %50 = vector.extract_strided_slice %0 {offsets = [3, 0], sizes = [1, 128], strides = [1, 1]} : vector<8x512xf32> to vector<1x128xf32>
    %51 = vector.broadcast %50 : vector<1x128xf32> to vector<8x128xf32>
    %52 = arith.addf %49, %51 : vector<8x128xf32>
    %c0_21 = arith.constant 0 : index
    %c0_22 = arith.constant 0 : index
    %53 = vector.load %arg7[%c0_21, %c0_22] : memref<8x128xf32, #tpu.memory_space<vmem>>, vector<8x128xf32>
    tpu.vector_store %arg7[%c0_21, %c0_22], %52 {strides = array<i32>} : memref<8x128xf32, #tpu.memory_space<vmem>>, vector<8x128xf32>,
    %54 = vector.extract_strided_slice %0 {offsets = [4, 0], sizes = [1, 128], strides = [1, 1]} : vector<8x512xf32> to vector<1x128xf32>
    %55 = vector.broadcast %54 : vector<1x128xf32> to vector<8x128xf32>
    %56 = arith.mulf %52, %55 : vector<8x128xf32>
    %57 = vector.shape_cast %56 : vector<8x128xf32> to vector<1x8x128xf32>
    %cst_23 = arith.constant dense<0.000000e+00> : vector<1xf32>
    %58 = vector.multi_reduction <add>, %57, %cst_23 [1, 2] : vector<1x8x128xf32> to vector<1xf32>
    %59 = vector.shape_cast %58 : vector<1xf32> to vector<1x1x1xf32>
    %60 = vector.extract %59[0, 0, 0] : f32 from vector<1x1x1xf32>
    %61 = vector.broadcast %60 : f32 to vector<8x128xf32>
    %c0_24 = arith.constant 0 : index
    %c0_25 = arith.constant 0 : index
    %62 = vector.load %arg8[%c0_24, %c0_25] : memref<8x128xf32, #tpu.memory_space<vmem>>, vector<8x128xf32>
    tpu.vector_store %arg8[%c0_24, %c0_25], %61 {strides = array<i32>} : memref<8x128xf32, #tpu.memory_space<vmem>>, vector<8x128xf32>,
    return
  }
  func.func @transform_0(%arg0: i32) -> (i32, i32) {
    %c0_i32 = arith.constant 0 : i32
    %c0_i32_0 = arith.constant 0 : i32
    return %arg0, %c0_i32 : i32, i32
  }
  func.func @transform_1(%arg0: i32) -> (i32, i32) {
    %c0_i32 = arith.constant 0 : i32
    %c0_i32_0 = arith.constant 0 : i32
    %c0_i32_1 = arith.constant 0 : i32
    return %c0_i32, %c0_i32_0 : i32, i32
  }
  func.func @transform_2(%arg0: i32) -> (i32, i32) {
    %c0_i32 = arith.constant 0 : i32
    %c0_i32_0 = arith.constant 0 : i32
    %c0_i32_1 = arith.constant 0 : i32
    return %c0_i32, %c0_i32_0 : i32, i32
  }
  func.func @transform_3(%arg0: i32) -> (i32, i32) {
    %c0_i32 = arith.constant 0 : i32
    %c0_i32_0 = arith.constant 0 : i32
    %c0_i32_1 = arith.constant 0 : i32
    return %c0_i32, %c0_i32_0 : i32, i32
  }
  func.func @transform_4(%arg0: i32) -> (i32, i32) {
    %c0_i32 = arith.constant 0 : i32
    %c0_i32_0 = arith.constant 0 : i32
    %c0_i32_1 = arith.constant 0 : i32
    return %c0_i32, %c0_i32_0 : i32, i32
  }
  func.func @transform_5(%arg0: i32) -> (i32, i32) {
    %c0_i32 = arith.constant 0 : i32
    %c0_i32_0 = arith.constant 0 : i32
    %c0_i32_1 = arith.constant 0 : i32
    return %c0_i32, %c0_i32_0 : i32, i32
  }
  func.func @transform_6(%arg0: i32) -> (i32, i32) {
    %c0_i32 = arith.constant 0 : i32
    %c0_i32_0 = arith.constant 0 : i32
    return %arg0, %c0_i32 : i32, i32
  }
  func.func @transform_7(%arg0: i32) -> (i32, i32) {
    %c0_i32 = arith.constant 0 : i32
    %c0_i32_0 = arith.constant 0 : i32
    return %c0_i32, %arg0 : i32, i32
  }
}

</mosaic_0001>

<bundles_post_ra>
// kernel: tpu_custom_call.1
= control target key start
LH: loop header
LB: loop body
LE: loop exit
PB: predicated region body
PF: predicated region fallthrough
CT: control target
= control target key end

     0   :  { %13 = vsyncpa [#allocation3], 0  ;;  %s1894_s0 = inlined_call_operand.hbm [shape: f32[8,16], index: 0, kind: input, shape index: {}]   ;;  %s1895_s1 = inlined_call_operand.hbm [shape: bf16[16,512], index: 1, kind: input, shape index: {}]   ;;  %s1896_s2 = inlined_call_operand.hbm [shape: bf16[256,512], index: 2, kind: input, shape index: {}]   ;;  %s1897_s3 = inlined_call_operand.hbm [shape: bf16[256,256], index: 3, kind: input, shape index: {}]   ;;  %s1898_s4 = inlined_call_operand.hbm [shape: bf16[256,128], index: 4, kind: input, shape index: {}]   ;;  %s1899_s5 = inlined_call_operand.hbm [shape: f32[8,512], index: 5, kind: input, shape index: {}]   ;;  %s1900_s6 = inlined_call_operand.hbm [shape: f32[8,128], index: 6, kind: output, shape index: {0}]   ;;  %s1901_s7 = inlined_call_operand.hbm [shape: f32[8,128], index: 7, kind: output, shape index: {1}]  }
   0x1   :  { %14 = vsyncpa [#allocation6], 0 }
   0x2   :  { %15 = vsyncpa [#allocation9], 0 }
   0x3   :  { %16 = vsyncpa [#allocation12], 0 }
   0x4   :  { %17 = vsyncpa [#allocation4], 0 }
   0x5   :  { %18 = vsyncpa [#allocation15], 0  ;;  %s1780_s24 = smov [#allocation5]  }
   0x6   :  { %s34_s25 = sshll.u32 %s1780_s24, 4  ;;  %s35_s25 = int_to_ptr.vmem [resolvable:$true] %s34_s25 }
   0x7   :  { %s1616_s26 = scalar_lea.vmem %s35_s25, 512  ;;  %p1621_p1 = scmp.lt.s32.totalorder %s35_s25, %s35_s25 }
   0x8   :  { %p1617_p0 = scmp.ne.s32.totalorder %s35_s25, %s1616_s26  ;;  %p1622_p2 = scmp.lt.s32.totalorder %s1616_s26, %s1616_s26 }
   0xa   :  { %p1623_p3 = por %p1622_p2, %p1621_p1 }
   0xc   :  { %p1624_p4 = pnand %p1623_p3, %p1617_p0 }
   0xe   :  { %1627 = shalt.err (!%p1624_p4)
}
   0xf   :  { %s1781_s27 = smov 256   ;;  %s1782_s28 = smov 16  }
  0x10   :  { %40 = dma.hbm_to_vmem [thread:$0]  %s1895_s1, 512, %s35_s25, [#allocation6], %s1781_s27, %s1781_s27, %s1782_s28  }
  0x11   :  { %s1783_s8 = smov [#allocation8]  }
  0x12   :  { %s58_s9 = sshll.u32 %s1783_s8, 4  ;;  %s59_s9 = int_to_ptr.vmem [resolvable:$true] %s58_s9 }
  0x13   :  { %s1636_s10 = scalar_lea.vmem %s59_s9, 4096  ;;  %p1641_p6 = scmp.lt.s32.totalorder %s59_s9, %s59_s9 }
  0x14   :  { %p1637_p5 = scmp.ne.s32.totalorder %s59_s9, %s1636_s10  ;;  %p1642_p7 = scmp.lt.s32.totalorder %s1636_s10, %s1636_s10 }
  0x16   :  { %p1643_p8 = por %p1642_p7, %p1641_p6 }
  0x18   :  { %p1644_p9 = pnand %p1643_p8, %p1637_p5 }
  0x1a   :  { %1647 = shalt.err (!%p1644_p9)
}
  0x1b   :  { %s1784_s11 = smov 128   ;;  %s1785_s12 = smov 8  }
  0x1c   :  { %64 = dma.hbm_to_vmem [thread:$0]  %s1897_s3, 4096, %s59_s9, [#allocation9], %s1784_s11, %s1784_s11, %s1785_s12  }
  0x1d   :  { %s1786_s15 = smov [#allocation2]   ;;  %s1787_s17 = smov [#allocation7]  }
  0x1e   :  { %s25_s16 = sshll.u32 %s1786_s15, 4  ;;  %s46_s1 = sshll.u32 %s1787_s17, 4  ;;  %s26_s16 = int_to_ptr.vmem [resolvable:$true] %s25_s16  ;;  %s47_s1 = int_to_ptr.vmem [resolvable:$true] %s46_s1 }
  0x1f   :  { %s1656_s18 = scalar_lea.vmem %s26_s16, 128  ;;  %p1661_p11 = scmp.lt.s32.totalorder %s26_s16, %s26_s16 }
  0x20   :  { %p1657_p10 = scmp.ne.s32.totalorder %s26_s16, %s1656_s18  ;;  %p1662_p12 = scmp.lt.s32.totalorder %s1656_s18, %s1656_s18 }
  0x22   :  { %p1663_p13 = por %p1662_p12, %p1661_p11 }
  0x24   :  { %p1664_p0 = pnand %p1663_p13, %p1657_p10 }
  0x26   :  { %1667 = shalt.err (!%p1664_p0)
}
  0x27   :  { %28 = dma.hbm_to_vmem [thread:$0]  %s1894_s0, 128, %s26_s16, [#allocation3]  }
  0x28   :  { %s1676_s21 = scalar_lea.vmem %s47_s1, 8192  ;;  %p1681_p2 = scmp.lt.s32.totalorder %s47_s1, %s47_s1 }
  0x29   :  { %p1677_p1 = scmp.ne.s32.totalorder %s47_s1, %s1676_s21  ;;  %p1682_p3 = scmp.lt.s32.totalorder %s1676_s21, %s1676_s21 }
  0x2b   :  { %p1683_p4 = por %p1682_p3, %p1681_p2 }
  0x2d   :  { %p1684_p5 = pnand %p1683_p4, %p1677_p1 }
  0x2f   :  { %1687 = shalt.err (!%p1684_p5)
}
  0x30   :  { %52 = dma.hbm_to_vmem [thread:$0]  %s1896_s2, 8192, %s47_s1, [#allocation6], %s1781_s27, %s1781_s27, %s1782_s28  }
  0x31   :  { %s1788_s23 = smov [#allocation10]  }
  0x32   :  { %s70_s24 = sshll.u32 %s1788_s23, 4  ;;  %s71_s24 = int_to_ptr.vmem [resolvable:$true] %s70_s24 }
  0x33   :  { %s1696_s25 = scalar_lea.vmem %s71_s24, 2048  ;;  %p1701_p7 = scmp.lt.s32.totalorder %s71_s24, %s71_s24 }
  0x34   :  { %p1697_p6 = scmp.ne.s32.totalorder %s71_s24, %s1696_s25  ;;  %p1702_p8 = scmp.lt.s32.totalorder %s1696_s25, %s1696_s25 }
  0x36   :  { %p1703_p9 = por %p1702_p8, %p1701_p7 }
  0x38   :  { %p1704_p10 = pnand %p1703_p9, %p1697_p6 }
  0x3a   :  { %1707 = shalt.err (!%p1704_p10)
}
  0x3b   :  { %s1789_s0 = smov 64   ;;  %s1790_s26 = smov 4  }
  0x3c   :  { %76 = dma.hbm_to_vmem [thread:$0]  %s1898_s4, 2048, %s71_s24, [#allocation9], %s1789_s0, %s1789_s0, %s1790_s26  }
  0x3d   :  { %s1791_s8 = smov [#allocation11]  }
  0x3e   :  { %s83_s9 = sshll.u32 %s1791_s8, 4  ;;  %s84_s9 = int_to_ptr.vmem [resolvable:$true] %s83_s9 }
  0x3f   :  { %s1716_s2 = scalar_lea.vmem %s84_s9, 512  ;;  %p1721_p12 = scmp.lt.s32.totalorder %s84_s9, %s84_s9 }
  0x40   :  { %p1717_p11 = scmp.ne.s32.totalorder %s84_s9, %s1716_s2  ;;  %p1722_p13 = scmp.lt.s32.totalorder %s1716_s2, %s1716_s2 }
  0x42   :  { %p1723_p0 = por %p1722_p13, %p1721_p12 }
  0x44   :  { %p1724_p1 = pnand %p1723_p0, %p1717_p11 }
  0x46   :  { %1727 = shalt.err (!%p1724_p1)
}
  0x47   :  { %86 = dma.hbm_to_vmem [thread:$0]  %s1899_s5, 512, %s84_s9, [#allocation12]  }
  0x48   :  { %1768 = dma.done.wait [#allocation3], 128  }
  0x49   :  { %1769 = vsyncadd [#allocation3], 4294967168 }
  0x4a   :  { %1770 = dma.done.wait [#allocation6], 8704  }
  0x4b   :  { %1771 = vsyncadd [#allocation6], 4294958592 }
  0x4c   :  { %1772 = dma.done.wait [#allocation9], 6144  }
  0x4d   :  { %1773 = vsyncadd [#allocation9], 4294961152 }
  0x4e   :  { %1774 = dma.done.wait [#allocation12], 512  }
  0x4f   :  { %1775 = vsyncadd [#allocation12], 4294966784  ;;  %v1792_v0 = vmov 0   ;;  %v1442_v1 = vld [vmem:[#allocation5 + $0x4] ss:$16 sps:$4 sm:$0xff]   ;;  %v110_v3 = vld [vmem:[#allocation2] sm:$0xff] }
  0x50   :  { %188 = vmatprep.mubr.bf16.mxu1 %v1792_v0  ;;  %v1444_v2 = vld [vmem:[#allocation5] ss:$16 sps:$4 sm:$0xff]   ;;  %170 = vmatprep.subr.bf16.mxu1 %v1442_v1  ;;  %v111_v4 = vpack.c.bf16 %v110_v3, %v110_v3  ;;  %v1445_v5 = vld [vmem:[#allocation5 + $0x8] ss:$16 sps:$4 sm:$0xff]   ;;  %v1447_v6 = vld [vmem:[#allocation5 + $0xc] ss:$16 sps:$4 sm:$0xff]  }
  0x51   :  { %171 = vmatpush1.bf16.msra.mxu1 %v1444_v2  ;;  %vm152_vm0 = vcmask 130048   ;;  %v1448_v7 = vld [vmem:[#allocation7 + $0xe4] ss:$16 sps:$4 sm:$0xff]   ;;  %v1450_v8 = vld [vmem:[#allocation7 + $0xe0] ss:$16 sps:$4 sm:$0xff]   ;;  %s1793_s4 = smov [#allocation13]  }
  0x52   :  { %211 = vmatprep.subr.bf16.mxu1 %v1447_v6  ;;  %478 = vmatprep.subr.bf16.mxu0 %v1448_v7  ;;  %v1451_v9 = vld [vmem:[#allocation7 + $0xc4] ss:$16 sps:$4 sm:$0xff]   ;;  %v1453_v10 = vld [vmem:[#allocation7 + $0xc0] ss:$16 sps:$4 sm:$0xff]   ;;  %v1458_v12 = vld [vmem:[#allocation7 + $0xec] ss:$16 sps:$4 sm:$0xff]  }
  0x53   :  { %479 = vmatpush1.bf16.msra.mxu0 %v1450_v8  ;;  %v1454_v11 = vld [vmem:[#allocation7 + $0xa4] ss:$16 sps:$4 sm:$0xff]   ;;  %v1456_v13 = vld [vmem:[#allocation7 + $0xe8] ss:$16 sps:$4 sm:$0xff]   ;;  %v1459_v14 = vld [vmem:[#allocation7 + $0xa0] ss:$16 sps:$4 sm:$0xff]  }
  0x54   :  { %1245 = vmatmul.mubr.msk.bf16.vlgmr.msra.gmra.mxu1 %vm152_vm0, %v111_v4  ;;  %480 = vmatprep.subr.bf16.mxu0 %v1451_v9  ;;  %v1460_v15 = vld [vmem:[#allocation7 + $0x84] ss:$16 sps:$4 sm:$0xff]   ;;  %v1464_v16 = vld [vmem:[#allocation7 + $0xcc] ss:$16 sps:$4 sm:$0xff]   ;;  %v1465_v17 = vld [vmem:[#allocation7 + $0x80] ss:$16 sps:$4 sm:$0xff]   ;;  %v116_v9 = vlaneseq }
  0x55   :  { %212 = vmatpush1.bf16.msra.mxu1 %v1445_v5  ;;  %229 = vmatprep.mubr.bf16.mxu1 %v1792_v0  ;;  %v1462_v18 = vld [vmem:[#allocation7 + $0xc8] ss:$16 sps:$4 sm:$0xff]   ;;  %v1466_v19 = vld [vmem:[#allocation7 + $0x64] ss:$16 sps:$4 sm:$0xff]   ;;  %v1470_v20 = vld [vmem:[#allocation7 + $0xac] ss:$16 sps:$4 sm:$0xff]  }
  0x56   :  { %691 = vmatprep.subr.bf16.mxu1 %v1458_v12  ;;  %v1468_v21 = vld [vmem:[#allocation7 + $0xa8] ss:$16 sps:$4 sm:$0xff]   ;;  %v1471_v22 = vld [vmem:[#allocation7 + $0x60] ss:$16 sps:$4 sm:$0xff]   ;;  %v1472_v23 = vld [vmem:[#allocation7 + $0x44] ss:$16 sps:$4 sm:$0xff]  }
  0x57   :  { %481 = vmatpush1.bf16.msra.mxu0 %v1453_v10  ;;  %v1476_v24 = vld [vmem:[#allocation7 + $0x8c] ss:$16 sps:$4 sm:$0xff]   ;;  %v1477_v25 = vld [vmem:[#allocation7 + $0x40] ss:$16 sps:$4 sm:$0xff]   ;;  %v1474_v26 = vld [vmem:[#allocation7 + $0x88] ss:$16 sps:$4 sm:$0xff]  }
  0x58   :  { %482 = vmatprep.subr.bf16.mxu0 %v1454_v11  ;;  %v1478_v27 = vld [vmem:[#allocation7 + $0x24] ss:$16 sps:$4 sm:$0xff]   ;;  %v1482_v28 = vld [vmem:[#allocation7 + $0x6c] ss:$16 sps:$4 sm:$0xff]   ;;  %v1480_v29 = vld [vmem:[#allocation7 + $0x68] ss:$16 sps:$4 sm:$0xff]  }
  0x59   :  { %v1483_v30 = vld [vmem:[#allocation7 + $0x20] ss:$16 sps:$4 sm:$0xff]   ;;  %v1484_v31 = vld [vmem:[#allocation7 + $0x4] ss:$16 sps:$4 sm:$0xff]   ;;  %v1488_v32 = vld [vmem:[#allocation7 + $0x4c] ss:$16 sps:$4 sm:$0xff]  }
  0x5a   :  { %v1489_v33 = vld [vmem:[#allocation7] ss:$16 sps:$4 sm:$0xff]   ;;  %v1486_v34 = vld [vmem:[#allocation7 + $0x48] ss:$16 sps:$4 sm:$0xff]   ;;  %v1490_v35 = vld [vmem:[#allocation7 + $0x1e4] ss:$16 sps:$4 sm:$0xff]  }
  0x5b   :  { %483 = vmatpush1.bf16.msra.mxu0 %v1459_v14  ;;  %v1494_v36 = vld [vmem:[#allocation7 + $0x2c] ss:$16 sps:$4 sm:$0xff]   ;;  %v1492_v37 = vld [vmem:[#allocation7 + $0x28] ss:$16 sps:$4 sm:$0xff]   ;;  %v1495_v38 = vld [vmem:[#allocation7 + $0x1e0] ss:$16 sps:$4 sm:$0xff]  }
  0x5c   :  { %1246 = vmatmul.mubr.msk.bf16.vlgmr.msra.gmra.mxu1 %vm152_vm0, %v111_v4  ;;  %484 = vmatprep.subr.bf16.mxu0 %v1460_v15  ;;  %v1496_v39 = vld [vmem:[#allocation7 + $0x1c4] ss:$16 sps:$4 sm:$0xff]   ;;  %v1500_v40 = vld [vmem:[#allocation7 + $0xc] ss:$16 sps:$4 sm:$0xff]   ;;  %v1498_v41 = vld [vmem:[#allocation7 + $0x8] ss:$16 sps:$4 sm:$0xff]  }
  0x5d   :  { %692 = vmatpush1.bf16.msra.mxu1 %v1456_v13  ;;  %v1501_v42 = vld [vmem:[#allocation7 + $0x1c0] ss:$16 sps:$4 sm:$0xff]   ;;  %v1502_v43 = vld [vmem:[#allocation7 + $0x1a4] ss:$16 sps:$4 sm:$0xff]   ;;  %v1506_v44 = vld [vmem:[#allocation7 + $0x1ec] ss:$16 sps:$4 sm:$0xff]  }
  0x5e   :  { %693 = vmatprep.subr.bf16.mxu1 %v1464_v16  ;;  %v1507_v45 = vld [vmem:[#allocation7 + $0x1a0] ss:$16 sps:$4 sm:$0xff]   ;;  %v1504_v46 = vld [vmem:[#allocation7 + $0x1e8] ss:$16 sps:$4 sm:$0xff]   ;;  %v1508_v47 = vld [vmem:[#allocation7 + $0x184] ss:$16 sps:$4 sm:$0xff]  }
  0x5f   :  { %485 = vmatpush1.bf16.msra.mxu0 %v1465_v17  ;;  %v1512_v48 = vld [vmem:[#allocation7 + $0x1cc] ss:$16 sps:$4 sm:$0xff]   ;;  %v1513_v49 = vld [vmem:[#allocation7 + $0x180] ss:$16 sps:$4 sm:$0xff]   ;;  %v1510_v50 = vld [vmem:[#allocation7 + $0x1c8] ss:$16 sps:$4 sm:$0xff]  }
  0x60   :  { %486 = vmatprep.subr.bf16.mxu0 %v1466_v19  ;;  %v1514_v51 = vld [vmem:[#allocation7 + $0x164] ss:$16 sps:$4 sm:$0xff]   ;;  %v1518_v52 = vld [vmem:[#allocation7 + $0x1ac] ss:$16 sps:$4 sm:$0xff]   ;;  %v1519_v53 = vld [vmem:[#allocation7 + $0x160] ss:$16 sps:$4 sm:$0xff]  }
  0x61   :  { %694 = vmatpush1.bf16.msra.mxu1 %v1462_v18  ;;  %v1516_v54 = vld [vmem:[#allocation7 + $0x1a8] ss:$16 sps:$4 sm:$0xff]   ;;  %v1520_v55 = vld [vmem:[#allocation7 + $0x144] ss:$16 sps:$4 sm:$0xff]   ;;  %v1524_v56 = vld [vmem:[#allocation7 + $0x18c] ss:$16 sps:$4 sm:$0xff]  }
  0x62   :  { %695 = vmatprep.subr.bf16.mxu1 %v1470_v20  ;;  %v1525_v57 = vld [vmem:[#allocation7 + $0x140] ss:$16 sps:$4 sm:$0xff]   ;;  %v1522_v58 = vld [vmem:[#allocation7 + $0x188] ss:$16 sps:$4 sm:$0xff]   ;;  %v1526_v59 = vld [vmem:[#allocation7 + $0x124] ss:$16 sps:$4 sm:$0xff]  }
  0x63   :  { %487 = vmatpush1.bf16.msra.mxu0 %v1471_v22  ;;  %v1530_v60 = vld [vmem:[#allocation7 + $0x16c] ss:$16 sps:$4 sm:$0xff]   ;;  %v1528_v61 = vld [vmem:[#allocation7 + $0x168] ss:$16 sps:$4 sm:$0xff]   ;;  %v1531_v62 = vld [vmem:[#allocation7 + $0x120] ss:$16 sps:$4 sm:$0xff]  }
  0x64   :  { %488 = vmatprep.subr.bf16.mxu0 %v1472_v23  ;;  %v1532_v63 = vld [vmem:[#allocation7 + $0x104] ss:$16 sps:$4 sm:$0xff]   ;;  %v1536_v0 = vld [vmem:[#allocation7 + $0x14c] ss:$16 sps:$4 sm:$0xff]   ;;  %v1534_v1 = vld [vmem:[#allocation7 + $0x148] ss:$16 sps:$4 sm:$0xff]  }
  0x65   :  { %696 = vmatpush1.bf16.msra.mxu1 %v1468_v21  ;;  %v1537_v2 = vld [vmem:[#allocation7 + $0x100] ss:$16 sps:$4 sm:$0xff]   ;;  %v1540_v3 = vld [vmem:[#allocation7 + $0x12c] ss:$16 sps:$4 sm:$0xff]   ;;  %v1538_v4 = vld [vmem:[#allocation7 + $0x128] ss:$16 sps:$4 sm:$0xff]  }
  0x66   :  { %697 = vmatprep.subr.bf16.mxu1 %v1476_v24  ;;  %v1543_v5 = vld [vmem:[#allocation7 + $0x10c] ss:$16 sps:$4 sm:$0xff]   ;;  %v1541_v6 = vld [vmem:[#allocation7 + $0x108] ss:$16 sps:$4 sm:$0xff]   ;;  %v1861_v10 = vshrl.u32 %v116_v9, 7  ;;  %v1864_v12 = vld [vmem:[#allocation11] sm:$0xff] }
  0x67   :  { %489 = vmatpush1.bf16.msra.mxu0 %v1477_v25  ;;  %v1544_v7 = vld [vmem:[#allocation8 + $0xf0] ss:$8 sps:$4 sm:$0xff]   ;;  %v1554_v8 = vld [vmem:[#allocation8 + $0xf4] ss:$8 sps:$4 sm:$0xff]   ;;  %v1866_v13 = vld [vmem:[#allocation11 + $0x8] sm:$0xff]  ;;  %s1215_s5 = sshll.u32 %s1793_s4, 4  ;;  %s1216_s5 = int_to_ptr.vmem [resolvable:$true] %s1215_s5 }
  0x68   :  { %490 = vmatprep.subr.bf16.mxu0 %v1478_v27  ;;  %v118_v11 = vsub.s32 0, %v1861_v10  ;;  %v1870_v19 = vld [vmem:[#allocation11 + $0x10] sm:$0xff]  ;;  %v1872_v23 = vld [vmem:[#allocation11 + $0x18] sm:$0xff]  ;;  %s1728_s10 = scalar_lea.vmem %s1216_s5, 128  ;;  %p1733_p3 = scmp.lt.s32.totalorder %s1216_s5, %s1216_s5 }
  0x69   :  { %698 = vmatpush1.bf16.msra.mxu1 %v1474_v26  ;;  %p1729_p2 = scmp.ne.s32.totalorder %s1216_s5, %s1728_s10  ;;  %p1734_p4 = scmp.lt.s32.totalorder %s1728_s10, %s1728_s10 }
  0x6a   :  { %699 = vmatprep.subr.bf16.mxu1 %v1482_v28  ;;  %v119_v14 = vrot.slane %v1864_v12, %v118_v11  ;;  %v123_v15 = vrot.slane %v1866_v13, %v118_v11  ;;  %v127_v24 = vrot.slane %v1870_v19, %v118_v11  ;;  %v131_v28 = vrot.slane %v1872_v23, %v118_v11 }
  0x6b   :  { %491 = vmatpush1.bf16.msra.mxu0 %v1483_v30  ;;  %p1735_p5 = por %p1734_p4, %p1733_p3 }
  0x6c   :  { %492 = vmatprep.subr.bf16.mxu0 %v1484_v31 }
  0x6d   :  { %700 = vmatpush1.bf16.msra.mxu1 %v1480_v29  ;;  %v1546_v29 = vld [vmem:[#allocation8 + $0x70] ss:$8 sps:$4 sm:$0xff]   ;;  %p1736_p6 = pnand %p1735_p5, %p1729_p2 }
  0x6e   :  { %701 = vmatprep.subr.bf16.mxu1 %v1488_v32  ;;  %v1548_v32 = vld [vmem:[#allocation8 + $0xe0] ss:$8 sps:$4 sm:$0xff]  }
  0x6f   :  { %493 = vmatpush1.bf16.msra.mxu0 %v1489_v33 }
  0x70   :  { %494 = vmatprep.subr.bf16.mxu0 %v1490_v35 }
  0x71   :  { %702 = vmatpush1.bf16.msra.mxu1 %v1486_v34 }
  0x72   :  { %703 = vmatprep.subr.bf16.mxu1 %v1494_v36  ;;  %v1550_v36 = vld [vmem:[#allocation8 + $0x60] ss:$8 sps:$4 sm:$0xff]  }
  0x73   :  { %495 = vmatpush2.bf16.msra.mxu0 %v1495_v38 }
  0x74   :  { %496 = vmatprep.subr.bf16.mxu0 %v1496_v39  ;;  %v1552_v39 = vld [vmem:[#allocation8 + $0xd0] ss:$8 sps:$4 sm:$0xff]  }
  0x75   :  { %704 = vmatpush1.bf16.msra.mxu1 %v1492_v37 }
  0x76   :  { %705 = vmatprep.subr.bf16.mxu1 %v1500_v40 }
  0x77   :  { %497 = vmatpush2.bf16.msra.mxu0 %v1501_v42 }
  0x78   :  { %498 = vmatprep.subr.bf16.mxu0 %v1502_v43  ;;  %v1555_v43 = vld [vmem:[#allocation8 + $0x50] ss:$8 sps:$4 sm:$0xff]  }
  0x79   :  { %706 = vmatpush1.bf16.msra.mxu1 %v1498_v41 }
  0x7a   :  { %707 = vmatprep.subr.bf16.mxu1 %v1506_v44  ;;  %v1557_v44 = vld [vmem:[#allocation8 + $0x74] ss:$8 sps:$4 sm:$0xff]  }
  0x7b   :  { %499 = vmatpush2.bf16.msra.mxu0 %v1507_v45 }
  0x7c   :  { %500 = vmatprep.subr.bf16.mxu0 %v1508_v47  ;;  %v1560_v47 = vld [vmem:[#allocation8 + $0xe4] ss:$8 sps:$4 sm:$0xff]  }
  0x7d   :  { %708 = vmatpush2.bf16.msra.mxu1 %v1504_v46  ;;  %v1558_v46 = vld [vmem:[#allocation8 + $0xc0] ss:$8 sps:$4 sm:$0xff]  }
  0x7e   :  { %709 = vmatprep.subr.bf16.mxu1 %v1512_v48  ;;  %v1561_v48 = vld [vmem:[#allocation8 + $0x40] ss:$8 sps:$4 sm:$0xff]  }
  0x7f   :  { %501 = vmatpush2.bf16.msra.mxu0 %v1513_v49  ;;  %v1563_v49 = vld [vmem:[#allocation8 + $0x64] ss:$8 sps:$4 sm:$0xff]  }
  0x80   :  { %502 = vmatprep.subr.bf16.mxu0 %v1514_v51  ;;  %v1566_v51 = vld [vmem:[#allocation8 + $0xd4] ss:$8 sps:$4 sm:$0xff]  }
  0x81   :  { %710 = vmatpush2.bf16.msra.mxu1 %v1510_v50  ;;  %v1564_v50 = vld [vmem:[#allocation8 + $0xb0] ss:$8 sps:$4 sm:$0xff]  }
  0x82   :  { %711 = vmatprep.subr.bf16.mxu1 %v1518_v52  ;;  %v1567_v52 = vld [vmem:[#allocation8 + $0x30] ss:$8 sps:$4 sm:$0xff]  }
  0x83   :  { %503 = vmatpush2.bf16.msra.mxu0 %v1519_v53  ;;  %v1569_v53 = vld [vmem:[#allocation8 + $0x54] ss:$8 sps:$4 sm:$0xff]  }
  0x84   :  { %504 = vmatprep.subr.bf16.mxu0 %v1520_v55  ;;  %v1572_v55 = vld [vmem:[#allocation8 + $0xc4] ss:$8 sps:$4 sm:$0xff]  }
  0x85   :  { %712 = vmatpush2.bf16.msra.mxu1 %v1516_v54  ;;  %v1570_v54 = vld [vmem:[#allocation8 + $0xa0] ss:$8 sps:$4 sm:$0xff]  }
  0x86   :  { %713 = vmatprep.subr.bf16.mxu1 %v1524_v56  ;;  %v1573_v56 = vld [vmem:[#allocation8 + $0x20] ss:$8 sps:$4 sm:$0xff]  }
  0x87   :  { %505 = vmatpush2.bf16.msra.mxu0 %v1525_v57  ;;  %v1575_v57 = vld [vmem:[#allocation8 + $0x44] ss:$8 sps:$4 sm:$0xff]  }
  0x88   :  { %506 = vmatprep.subr.bf16.mxu0 %v1526_v59  ;;  %v1578_v59 = vld [vmem:[#allocation8 + $0xb4] ss:$8 sps:$4 sm:$0xff]  }
  0x89   :  { %714 = vmatpush2.bf16.msra.mxu1 %v1522_v58  ;;  %v1576_v58 = vld [vmem:[#allocation8 + $0x90] ss:$8 sps:$4 sm:$0xff]  }
  0x8a   :  { %715 = vmatprep.subr.bf16.mxu1 %v1530_v60  ;;  %v1579_v60 = vld [vmem:[#allocation8 + $0x10] ss:$8 sps:$4 sm:$0xff]  }
  0x8b   :  { %507 = vmatpush2.bf16.msra.mxu0 %v1531_v62  ;;  %v1582_v62 = vld [vmem:[#allocation8 + $0x80] ss:$8 sps:$4 sm:$0xff]  }
  0x8c   :  { %508 = vmatprep.subr.bf16.mxu0 %v1532_v63  ;;  %v1584_v63 = vld [vmem:[#allocation8 + $0xa4] ss:$8 sps:$4 sm:$0xff]  }
  0x8d   :  { %716 = vmatpush2.bf16.msra.mxu1 %v1528_v61  ;;  %v1581_v61 = vld [vmem:[#allocation8 + $0x34] ss:$8 sps:$4 sm:$0xff]  }
  0x8e   :  { %717 = vmatprep.subr.bf16.mxu1 %v1536_v0  ;;  %v1585_v0 = vld [vmem:[#allocation8] ss:$8 sps:$4 sm:$0xff]  }
  0x8f   :  { %509 = vmatpush2.bf16.msra.mxu0 %v1537_v2  ;;  %v1588_v2 = vld [vmem:[#allocation8 + $0x94] ss:$8 sps:$4 sm:$0xff]  }
  0x90   :  { %1359 = vmatprep.subr.bf16.mxu0 %v1544_v7  ;;  %v312_v7 = vsub.s32 1, %v1861_v10 }
  0x91   :  { %718 = vmatpush2.bf16.msra.mxu1 %v1534_v1  ;;  %v1587_v1 = vld [vmem:[#allocation8 + $0x24] ss:$8 sps:$4 sm:$0xff]  }
  0x92   :  { %719 = vmatprep.subr.bf16.mxu1 %v1540_v3  ;;  %v1589_v3 = vld [vmem:[#allocation8 + $0x14] ss:$8 sps:$4 sm:$0xff]   ;;  %v317_v9 = vrot.slane %v1866_v13, %v312_v7 }
  0x95   :  { %720 = vmatpush2.bf16.msra.mxu1 %v1538_v4  ;;  %v1590_v4 = vld [vmem:[#allocation8 + $0x84] ss:$8 sps:$4 sm:$0xff]  }
  0x96   :  { %721 = vmatprep.subr.bf16.mxu1 %v1543_v5  ;;  %v1591_v5 = vld [vmem:[#allocation8 + $0x4] ss:$8 sps:$4 sm:$0xff]  }
  0x99   :  { %722 = vmatpush2.bf16.msra.mxu1 %v1541_v6  ;;  %v1592_v6 = vld [vmem:[#allocation10 + $0x78] sm:$0xff]  }
  0x9a   :  { %1381 = vmatprep.subr.bf16.mxu1 %v1554_v8  ;;  %v313_v8 = vrot.slane %v1864_v12, %v312_v7 }
 0x114   :  { %v190_v16 = vpop.f32.mrf.mxu1 }
 0x115   :  { %v191_v17 = vadd.f32 %v190_v16, %v119_v14 }
 0x116   :  { %v192_v18 = vpop.f32.mrf.mxu1 }
 0x117   :  { %v193_v20 = vadd.f32 %v192_v18, %v123_v15  ;;  %v238_v21 = vmax.f32 %v191_v17, 0.0 }
 0x118   :  { %v194_v22 = vpop.f32.mrf.mxu1 }
 0x119   :  { %v239_v25 = vmax.f32 %v193_v20, 0.0  ;;  %v242_v30 = vpack.c.bf16 %v238_v21, %v238_v21  ;;  %v526_v21 = vrot.slane %v1870_v19, %v312_v7 }
 0x11a   :  { %v195_v26 = vpop.f32.mrf.mxu1 }
 0x11b   :  { %v243_v27 = vpack.c.bf16 %v239_v25, %v239_v25  ;;  %v530_v25 = vrot.slane %v1872_v23, %v312_v7  ;;  %v1593_v26 = vld [vmem:[#allocation10 + $0x38] sm:$0xff]   ;;  %v1597_v23 = vld [vmem:[#allocation10 + $0x28] sm:$0xff]  }
 0x11c   :  { %v231_v31 = vpop.f32.mrf.mxu1 }
 0x11d   :  { %v232_v33 = vadd.f32 %v231_v31, %v127_v24  ;;  %510 = vmatprep.mubr.bf16.mxu0 %v243_v27 }
 0x11e   :  { %v233_v34 = vpop.f32.mrf.mxu1  ;;  %511 = vmatmul.mubr.bf16.vlgmr.msra.gmra.mxu0 %v242_v30 }
 0x11f   :  { %v234_v35 = vadd.f32 %v233_v34, %v131_v28  ;;  %1360 = vmatpush3.bf16.msra.mxu0 %v1546_v29  ;;  %v240_v37 = vmax.f32 %v232_v33, 0.0  ;;  %v1594_v29 = vld [vmem:[#allocation10 + $0x70] sm:$0xff]  }
 0x120   :  { %v235_v38 = vpop.f32.mrf.mxu1  ;;  %1361 = vmatprep.subr.bf16.mxu0 %v1548_v32  ;;  %v1595_v33 = vld [vmem:[#allocation10 + $0x30] sm:$0xff]  }
 0x121   :  { %v241_v40 = vmax.f32 %v234_v35, 0.0  ;;  %v244_v45 = vpack.c.bf16 %v240_v37, %v240_v37 }
 0x122   :  { %v236_v41 = vpop.f32.mrf.mxu1 }
 0x123   :  { %v245_v42 = vpack.c.bf16 %v241_v40, %v241_v40  ;;  %1362 = vmatpush3.bf16.msra.mxu0 %v1550_v36  ;;  %v1596_v36 = vld [vmem:[#allocation10 + $0x68] sm:$0xff]   ;;  %v1598_v40 = vld [vmem:[#allocation10 + $0x60] sm:$0xff]  }
 0x124   :  { %1363 = vmatprep.subr.bf16.mxu0 %v1552_v39  ;;  %v1599_v41 = vld [vmem:[#allocation10 + $0x20] sm:$0xff]  }
 0x125   :  { %723 = vmatprep.mubr.bf16.mxu1 %v245_v42  ;;  %v1600_v42 = vld [vmem:[#allocation10 + $0x58] sm:$0xff]  }
 0x126   :  { %724 = vmatmul.mubr.bf16.vlgmr.msra.gmra.mxu1 %v244_v45  ;;  %v1603_v45 = vld [vmem:[#allocation10 + $0x10] sm:$0xff]  }
 0x127   :  { %1364 = vmatpush3.bf16.msra.mxu0 %v1555_v43  ;;  %1382 = vmatpush3.bf16.msra.mxu1 %v1557_v44  ;;  %v1601_v43 = vld [vmem:[#allocation10 + $0x18] sm:$0xff]   ;;  %v1602_v44 = vld [vmem:[#allocation10 + $0x50] sm:$0xff]  }
 0x128   :  { %1365 = vmatprep.subr.bf16.mxu0 %v1558_v46  ;;  %1383 = vmatprep.subr.bf16.mxu1 %v1560_v47  ;;  %v1604_v46 = vld [vmem:[#allocation10 + $0x48] sm:$0xff]  }
 0x129   :  { %v1605_v47 = vld [vmem:[#allocation10 + $0x8] sm:$0xff]  }
 0x12b   :  { %1366 = vmatpush3.bf16.msra.mxu0 %v1561_v48  ;;  %1384 = vmatpush3.bf16.msra.mxu1 %v1563_v49  ;;  %v1606_v48 = vld [vmem:[#allocation10 + $0x40] sm:$0xff]  }
 0x12c   :  { %1367 = vmatprep.subr.bf16.mxu0 %v1564_v50  ;;  %1385 = vmatprep.subr.bf16.mxu1 %v1566_v51  ;;  %v1607_v49 = vld [vmem:[#allocation10] sm:$0xff]   ;;  %v770_v51 = vsub.s32 2, %v1861_v10 }
 0x12f   :  { %1368 = vmatpush3.bf16.msra.mxu0 %v1567_v52  ;;  %1386 = vmatpush3.bf16.msra.mxu1 %v1569_v53 }
 0x130   :  { %1369 = vmatprep.subr.bf16.mxu0 %v1570_v54  ;;  %1387 = vmatprep.subr.bf16.mxu1 %v1572_v55  ;;  %v771_v54 = vrot.slane %v1864_v12, %v770_v51 }
 0x133   :  { %1370 = vmatpush3.bf16.msra.mxu0 %v1573_v56  ;;  %1388 = vmatpush3.bf16.msra.mxu1 %v1575_v57 }
 0x134   :  { %1371 = vmatprep.subr.bf16.mxu0 %v1576_v58  ;;  %1389 = vmatprep.subr.bf16.mxu1 %v1578_v59  ;;  %v913_v58 = vrot.slane %v1866_v13, %v770_v51 }
 0x137   :  { %1372 = vmatpush3.bf16.msra.mxu0 %v1579_v60  ;;  %1390 = vmatpush3.bf16.msra.mxu1 %v1581_v61 }
 0x138   :  { %1373 = vmatprep.subr.bf16.mxu0 %v1582_v62  ;;  %1391 = vmatprep.subr.bf16.mxu1 %v1584_v63 }
 0x13b   :  { %1374 = vmatpush3.bf16.msra.mxu0 %v1585_v0  ;;  %1392 = vmatpush3.bf16.msra.mxu1 %v1587_v1 }
 0x13c   :  { %1393 = vmatprep.subr.bf16.mxu1 %v1588_v2  ;;  %1403 = vmatprep.subr.bf16.mxu0 %v1592_v6  ;;  %v1195_v6 = vsub.s32 4, %v1861_v10 }
 0x13f   :  { %1394 = vmatpush3.bf16.msra.mxu1 %v1589_v3 }
 0x140   :  { %1395 = vmatprep.subr.bf16.mxu1 %v1590_v4 }
 0x143   :  { %1396 = vmatpush3.bf16.msra.mxu1 %v1591_v5  ;;  %v1054_v5 = vsub.s32 3, %v1861_v10 }
 0x1de   :  { %v512_v11 = vpop.f32.mrf.mxu0 }
 0x1df   :  { %v513_v14 = vadd.f32 %v512_v11, %v313_v8  ;;  %v1055_v8 = vrot.slane %v1864_v12, %v1054_v5  ;;  %v1196_v11 = vrot.slane %v1864_v12, %v1195_v6 }
 0x1e0   :  { %v514_v15 = vpop.f32.mrf.mxu0 }
 0x1e1   :  { %v515_v16 = vadd.f32 %v514_v15, %v317_v9  ;;  %v519_v17 = vmax.f32 %v513_v14, 0.0 }
 0x1e2   :  { %v516_v18 = vpop.f32.mrf.mxu0 }
 0x1e3   :  { %v520_v20 = vmax.f32 %v515_v16, 0.0  ;;  %v521_v27 = vpack.c.bf16 %v519_v17, %v519_v17 }
 0x1e4   :  { %v517_v22 = vpop.f32.mrf.mxu0 }
 0x1e5   :  { %v522_v24 = vpack.c.bf16 %v520_v20, %v520_v20 }
 0x1e6   :  { %v725_v28 = vpop.f32.mrf.mxu1 }
 0x1e7   :  { %v726_v30 = vadd.f32 %v725_v28, %v526_v21  ;;  %900 = vmatprep.mubr.bf16.mxu0 %v522_v24 }
 0x1e8   :  { %v727_v31 = vpop.f32.mrf.mxu1  ;;  %901 = vmatmul.mubr.bf16.vlgmr.msra.gmra.mxu0 %v521_v27 }
 0x1e9   :  { %v728_v32 = vadd.f32 %v727_v31, %v530_v25  ;;  %1404 = vmatpush3.bf16.msra.mxu0 %v1593_v26  ;;  %v732_v34 = vmax.f32 %v726_v30, 0.0 }
 0x1ea   :  { %v729_v35 = vpop.f32.mrf.mxu1  ;;  %1405 = vmatprep.subr.bf16.mxu0 %v1594_v29 }
 0x1eb   :  { %v733_v19 = vmax.f32 %v728_v32, 0.0  ;;  %v734_v39 = vpack.c.bf16 %v732_v34, %v732_v34 }
 0x1ec   :  { %v730_v37 = vpop.f32.mrf.mxu1 }
 0x1ed   :  { %v735_v38 = vpack.c.bf16 %v733_v19, %v733_v19  ;;  %1406 = vmatpush3.bf16.msra.mxu0 %v1595_v33 }
 0x1ee   :  { %1407 = vmatprep.subr.bf16.mxu0 %v1596_v36 }
 0x1ef   :  { %1010 = vmatprep.mubr.bf16.mxu1 %v735_v38 }
 0x1f0   :  { %1011 = vmatmul.mubr.bf16.vlgmr.msra.gmra.mxu1 %v734_v39 }
 0x1f1   :  { %1408 = vmatpush3.bf16.msra.mxu0 %v1597_v23 }
 0x1f2   :  { %1409 = vmatprep.subr.bf16.mxu0 %v1598_v40 }
 0x1f5   :  { %1410 = vmatpush3.bf16.msra.mxu0 %v1599_v41 }
 0x1f6   :  { %1411 = vmatprep.subr.bf16.mxu0 %v1600_v42 }
 0x1f9   :  { %1412 = vmatpush3.bf16.msra.mxu0 %v1601_v43 }
 0x1fa   :  { %1413 = vmatprep.subr.bf16.mxu0 %v1602_v44 }
 0x1fd   :  { %1414 = vmatpush3.bf16.msra.mxu0 %v1603_v45 }
 0x1fe   :  { %1415 = vmatprep.subr.bf16.mxu0 %v1604_v46 }
 0x201   :  { %1416 = vmatpush3.bf16.msra.mxu0 %v1605_v47 }
 0x202   :  { %1417 = vmatprep.subr.bf16.mxu0 %v1606_v48 }
 0x205   :  { %1418 = vmatpush3.bf16.msra.mxu0 %v1607_v49 }
 0x2a8   :  { %v1375_v50 = vpop.f32.mrf.mxu0 }
 0x2aa   :  { %v1376_v52 = vpop.f32.mrf.mxu0 }
 0x2ab   :  { %v1377_v55 = vadd.f32 %v1376_v52, %v1375_v50 }
 0x2ac   :  { %v1378_v53 = vpop.f32.mrf.mxu0 }
 0x2ad   :  { %v903_v59 = vadd.f32 %v1377_v55, %v771_v54 }
 0x2ae   :  { %v1379_v56 = vpop.f32.mrf.mxu0 }
 0x2af   :  { %v908_v0 = vmax.f32 %v903_v59, 0.0 }
 0x2b0   :  { %v1397_v57 = vpop.f32.mrf.mxu1 }
 0x2b1   :  { %v909_v4 = vpack.c.bf16 %v908_v0, %v908_v0 }
 0x2b2   :  { %v1398_v60 = vpop.f32.mrf.mxu1 }
 0x2b3   :  { %v1399_v61 = vadd.f32 %v1398_v60, %v1397_v57 }
 0x2b4   :  { %v1400_v62 = vpop.f32.mrf.mxu1 }
 0x2b5   :  { %v1013_v63 = vadd.f32 %v1399_v61, %v913_v58 }
 0x2b6   :  { %v1401_v1 = vpop.f32.mrf.mxu1 }
 0x2b7   :  { %v1018_v2 = vmax.f32 %v1013_v63, 0.0 }
 0x2b9   :  { %v1019_v3 = vpack.c.bf16 %v1018_v2, %v1018_v2 }
 0x2bb   :  { %1184 = vmatprep.mubr.bf16.mxu0 %v1019_v3 }
 0x2bc   :  { %1185 = vmatmul.mubr.bf16.vlgmr.msra.gmra.mxu0 %v909_v4 }
 0x37c   :  { %v1419_v7 = vpop.f32.mrf.mxu0 }
 0x37e   :  { %v1420_v13 = vpop.f32.mrf.mxu0 }
 0x37f   :  { %v1421_v9 = vadd.f32 %v1420_v13, %v1419_v7 }
 0x380   :  { %v1422_v14 = vpop.f32.mrf.mxu0 }
 0x381   :  { %v1187_v15 = vadd.f32 %v1421_v9, %v1055_v8 }
 0x382   :  { %v1423_v16 = vpop.f32.mrf.mxu0 }
 0x383   :  { %v1197_v17 = vmul.f32 %v1196_v11, %v1187_v15  ;;  %1192 = vst [vmem:[#allocation13] sm:$0xff] %v1187_v15 }
 0x385   :  { %1198 = vadd.xlane.f32.xlu0 %v1197_v17 }
 0x386   :  { %1739 = shalt.err (!%p1736_p6)
}
 0x387   :  { %1218 = dma.vmem_to_hbm [thread:$0]  %s1216_s5, 128, %s1900_s6, [#allocation4]  }
 0x388   :  { %s1794_s13 = smov [#allocation14]  }
 0x389   :  { %s1225_s14 = sshll.u32 %s1794_s13, 4  ;;  %s1226_s14 = int_to_ptr.vmem [resolvable:$true] %s1225_s14 }
 0x38a   :  { %s1748_s16 = scalar_lea.vmem %s1226_s14, 128  ;;  %p1753_p8 = scmp.lt.s32.totalorder %s1226_s14, %s1226_s14 }
 0x38b   :  { %p1749_p7 = scmp.ne.s32.totalorder %s1226_s14, %s1748_s16  ;;  %p1754_p9 = scmp.lt.s32.totalorder %s1748_s16, %s1748_s16 }
 0x38d   :  { %p1755_p10 = por %p1754_p9, %p1753_p8 }
 0x38f   :  { %p1756_p11 = pnand %p1755_p10, %p1749_p7 }
 0x40e   :  { %v1199_v10 = vpop.xlane.xlu0 %1198 }
 0x40f   :  { %v1200_v12 = vrot.slane %v1199_v10, 4 }
 0x411   :  { %v1201_v18 = vadd.f32 %v1200_v12, %v1199_v10 }
 0x413   :  { %v1202_v20 = vrot.slane %v1201_v18, 2 }
 0x415   :  { %v1203_v21 = vadd.f32 %v1202_v20, %v1201_v18 }
 0x417   :  { %v1204_v22 = vrot.slane %v1203_v21, 1 }
 0x419   :  { %v1205_v24 = vadd.f32 %v1204_v22, %v1203_v21 }
 0x41b   :  { %1425 = vpush %v1205_v24 }
 0x44c   :  { %s1426_s15 = spop %1425 }
 0x44d   :  { %v1207_v25 = vstv %s1426_s15 }
 0x44e   :  { %1208 = vst [vmem:[#allocation14] sm:$0xff] %v1207_v25 }
 0x44f   :  { %1759 = shalt.err (!%p1756_p11)
}
 0x450   :  { %1228 = dma.vmem_to_hbm [thread:$0]  %s1226_s14, 128, %s1901_s7, [#allocation15]  }
 0x451   :  { %1776 = dma.done.wait [#allocation4], 128  }
 0x452   :  { %1777 = vsyncadd [#allocation4], 4294967168 }
 0x453   :  { %1778 = dma.done.wait [#allocation15], 128  }
 0x454   :  { %1779 = vsyncadd [#allocation15], 4294967168 }
 0x455   :  { %1235 = vsyncpa [#allocation3], 1 }
 0x456   :  { %1236 = vsyncpa [#allocation6], 1 }
 0x457   :  { %1237 = vsyncpa [#allocation9], 1 }
 0x458   :  { %1238 = vsyncpa [#allocation12], 1 }
 0x459   :  { %1239 = vsyncpa [#allocation4], 1 }
 0x45a   :  { %1240 = vsyncpa [#allocation15], 1 }

</bundles_post_ra>
